<compile_context>
chip_gen: v7x
topology: tpu7x:2x2x1
jax: 0.10.0
libtpu: 0.0.40
codegen_flags: <defaults>
</compile_context>

<pallas_src>
import functools

import jax
import jax.numpy as jnp
from jax import lax
from jax.experimental import pallas as pl
from jax.experimental.pallas import tpu as pltpu


def _round_up(x, m):
    return ((x + m - 1) // m) * m


_CONTRACT_LAST = (((1,), (1,)), ((), ()))   # x:(bm,bk) . w:(bn,bk) -> (bm,bn)


# ---------------------------------------------------------------------------
# Multi-K-block kernels (3-D grid, f32 accumulator scratch).
# ---------------------------------------------------------------------------
def _lt_kernel_bias_acc(x_ref, w_ref, b_ref, o_ref, acc_ref):
    k = pl.program_id(2)

    @pl.when(k == 0)
    def _():
        acc_ref[...] = jnp.zeros_like(acc_ref)

    acc_ref[...] += lax.dot_general(
        x_ref[...], w_ref[...], dimension_numbers=_CONTRACT_LAST,
        preferred_element_type=jnp.float32)

    @pl.when(k == pl.num_programs(2) - 1)
    def _():
        # NOTE: bias is added AFTER tanh (matches the LinearTanh module).
        o_ref[...] = (jnp.tanh(acc_ref[...]) + b_ref[...]).astype(o_ref.dtype)


def _lt_kernel_nobias_acc(x_ref, w_ref, o_ref, acc_ref):
    k = pl.program_id(2)

    @pl.when(k == 0)
    def _():
        acc_ref[...] = jnp.zeros_like(acc_ref)

    acc_ref[...] += lax.dot_general(
        x_ref[...], w_ref[...], dimension_numbers=_CONTRACT_LAST,
        preferred_element_type=jnp.float32)

    @pl.when(k == pl.num_programs(2) - 1)
    def _():
        o_ref[...] = jnp.tanh(acc_ref[...]).astype(o_ref.dtype)


# ---------------------------------------------------------------------------
# Single-K-block kernels (2-D grid, no scratch): dot -> tanh (+bias) -> store.
# ---------------------------------------------------------------------------
def _lt_kernel_bias_single(x_ref, w_ref, b_ref, o_ref):
    acc = lax.dot_general(
        x_ref[...], w_ref[...], dimension_numbers=_CONTRACT_LAST,
        preferred_element_type=jnp.float32)
    o_ref[...] = (jnp.tanh(acc) + b_ref[...]).astype(o_ref.dtype)


def _lt_kernel_nobias_single(x_ref, w_ref, o_ref):
    acc = lax.dot_general(
        x_ref[...], w_ref[...], dimension_numbers=_CONTRACT_LAST,
        preferred_element_type=jnp.float32)
    o_ref[...] = jnp.tanh(acc).astype(o_ref.dtype)


@functools.partial(
    jax.jit, static_argnames=("block_m_max", "block_n_max", "block_k_max"))
def linear_tanh(x, W, b=None, *, block_m_max=512, block_n_max=512,
                block_k_max=512):
    """Pallas implementation of LinearTanh.forward.

    x: [..., in_dim] float32 (leading dims flattened into the batch)
    W: [out_dim, in_dim] float32 (PyTorch convention, NOT transposed here)
    b: optional [out_dim] float32, added AFTER the tanh (matching the module)
    returns: [..., out_dim] float32
    """
    orig_lead = x.shape[:-1]
    in_dim = x.shape[-1]
    out_dim, w_in = W.shape
    assert w_in == in_dim

    x2 = x.reshape(-1, in_dim) if x.ndim != 2 else x
    batch = x2.shape[0]

    # Tile sizes: M multiple of 8 (sublane), N/K multiples of 128 (lane-dense).
    block_m = min(block_m_max, _round_up(batch, 8))
    block_n = min(block_n_max, _round_up(out_dim, 128))
    block_k = min(block_k_max, _round_up(in_dim, 128))

    m_pad = _round_up(batch, block_m)
    n_pad = _round_up(out_dim, block_n)
    k_pad = _round_up(in_dim, block_k)

    # Zero-pad only when needed: zeros contribute nothing to the contraction
    # and the padded output rows/cols are sliced off below.
    x_p = x2
    if (m_pad, k_pad) != (batch, in_dim):
        x_p = jnp.pad(x2, ((0, m_pad - batch), (0, k_pad - in_dim)))
    w_p = W
    if (n_pad, k_pad) != (out_dim, in_dim):
        w_p = jnp.pad(W, ((0, n_pad - out_dim), (0, k_pad - in_dim)))

    gm, gn, gk = m_pad // block_m, n_pad // block_n, k_pad // block_k
    out_shape = jax.ShapeDtypeStruct((m_pad, n_pad), x.dtype)
    single_k = gk == 1

    # Double-buffered in/out tiles (+ f32 accumulator in the multi-K case),
    # with headroom; stays well inside the v7x 64 MiB physical VMEM.
    tile_bytes = 4 * (block_m * block_k + block_n * block_k
                      + block_m * block_n + block_n)
    acc_bytes = 0 if single_k else 4 * block_m * block_n
    vmem_limit = int(min(max(2 * tile_bytes + acc_bytes + (8 << 20),
                             32 * 1024 * 1024),
                         48 * 1024 * 1024))

    if single_k:
        grid = (gm, gn)
        x_spec = pl.BlockSpec((block_m, block_k), lambda i, j: (i, 0))
        w_spec = pl.BlockSpec((block_n, block_k), lambda i, j: (j, 0))
        b_spec = pl.BlockSpec((1, block_n), lambda i, j: (0, j))
        out_spec = pl.BlockSpec((block_m, block_n), lambda i, j: (i, j))
        scratch = []
        semantics = ("parallel", "parallel")
        kern = _lt_kernel_bias_single if b is not None else _lt_kernel_nobias_single
    else:
        grid = (gm, gn, gk)
        x_spec = pl.BlockSpec((block_m, block_k), lambda i, j, k: (i, k))
        w_spec = pl.BlockSpec((block_n, block_k), lambda i, j, k: (j, k))
        b_spec = pl.BlockSpec((1, block_n), lambda i, j, k: (0, j))
        out_spec = pl.BlockSpec((block_m, block_n), lambda i, j, k: (i, j))
        scratch = [pltpu.VMEM((block_m, block_n), jnp.float32)]
        semantics = ("parallel", "parallel", "arbitrary")
        kern = _lt_kernel_bias_acc if b is not None else _lt_kernel_nobias_acc

    cparams = pltpu.CompilerParams(
        dimension_semantics=semantics,
        vmem_limit_bytes=vmem_limit,
    )

    if b is not None:
        b_p = b.reshape(1, out_dim)
        if n_pad != out_dim:
            b_p = jnp.pad(b_p, ((0, 0), (0, n_pad - out_dim)))
        in_specs = [x_spec, w_spec, b_spec]
        args = (x_p, w_p, b_p)
    else:
        in_specs = [x_spec, w_spec]
        args = (x_p, w_p)

    out_p = pl.pallas_call(
        kern,
        out_shape=out_shape,
        grid_spec=pltpu.PrefetchScalarGridSpec(
            num_scalar_prefetch=0,
            grid=grid,
            in_specs=in_specs,
            out_specs=out_spec,
            scratch_shapes=scratch,
        ),
        compiler_params=cparams,
    )(*args)

    out = out_p
    if (m_pad, n_pad) != (batch, out_dim):
        out = out[:batch, :out_dim]
    return out.reshape(orig_lead + (out_dim,))


if __name__ == "__main__":
    key = jax.random.PRNGKey(0)
    k_x, k_w, k_b, k_x2, k_w2, k_x3, k_w3 = jax.random.split(key, 7)

    # Small shapes consistent with the module.
    batch, in_dim, out_dim = 16, 32, 64

    # Deterministic parameter init mirroring the module:
    #   W = (2*rand(out_dim, in_dim) - 1) / sqrt(in_dim)
    #   b = (2*rand(out_dim)        - 1) / sqrt(in_dim)
    scale = 1.0 / jnp.sqrt(jnp.float32(in_dim))
    W = (2.0 * jax.random.uniform(k_w, (out_dim, in_dim), jnp.float32) - 1.0) * scale
    b = (2.0 * jax.random.uniform(k_b, (out_dim,), jnp.float32) - 1.0) * scale
    x = jax.random.normal(k_x, (batch, in_dim), jnp.float32)

    # bias=True path
    out = jax.block_until_ready(linear_tanh(x, W, b))
    # bias=False path
    out_nb = jax.block_until_ready(linear_tanh(x, W, None))

    ref = jnp.tanh(x @ W.T) + b
    ref_nb = jnp.tanh(x @ W.T)
    assert out.shape == (batch, out_dim)
    assert jnp.allclose(out, ref, atol=1e-5, rtol=1e-5)
    assert jnp.allclose(out_nb, ref_nb, atol=1e-5, rtol=1e-5)

    # Non-aligned small shapes to exercise the padding / tail handling path.
    b2, d_in2, d_out2 = 20, 48, 72
    scale2 = 1.0 / jnp.sqrt(jnp.float32(d_in2))
    W2 = (2.0 * jax.random.uniform(k_w2, (d_out2, d_in2), jnp.float32) - 1.0) * scale2
    x2 = jax.random.normal(k_x2, (b2, d_in2), jnp.float32)
    out2 = jax.block_until_ready(linear_tanh(x2, W2, None))
    ref2 = jnp.tanh(x2 @ W2.T)
    assert out2.shape == (b2, d_out2)
    assert jnp.allclose(out2, ref2, atol=1e-5, rtol=1e-5)

    # 3-D input (e.g. [time, trials, in_dim]) to exercise leading-dim flattening.
    T3, B3, d_in3, d_out3 = 4, 5, 48, 40
    scale3 = 1.0 / jnp.sqrt(jnp.float32(d_in3))
    W3 = (2.0 * jax.random.uniform(k_w3, (d_out3, d_in3), jnp.float32) - 1.0) * scale3
    x3 = jax.random.normal(k_x3, (T3, B3, d_in3), jnp.float32)
    out3 = jax.block_until_ready(linear_tanh(x3, W3, None))
    ref3 = jnp.tanh(x3 @ W3.T)
    assert out3.shape == (T3, B3, d_out3)
    assert jnp.allclose(out3, ref3, atol=1e-5, rtol=1e-5)

    print("KERNEL_OK")
</pallas_src>

<mosaic_0001>
module attributes {stable_mosaic.version = 11 : i64} {
  func.func @_lt_kernel_bias_single(%arg0: i32, %arg1: i32, %arg2: memref<16x128xf32, #tpu.memory_space<vmem>>, %arg3: memref<128x128xf32, #tpu.memory_space<vmem>>, %arg4: memref<1x128xf32, #tpu.memory_space<vmem>>, %arg5: memref<16x128xf32, #tpu.memory_space<vmem>>) attributes {dimension_semantics = [#tpu.dimension_semantics<parallel>, #tpu.dimension_semantics<parallel>], iteration_bounds = array<i64: 1, 1>, scalar_prefetch = 0 : i64, scratch_operands = 0 : i64, tpu.core_type = #tpu.core_type<tc>, window_params = [{transform_indices = @transform_0, window_bounds = array<i64: 16, 128>}, {transform_indices = @transform_1, window_bounds = array<i64: 128, 128>}, {transform_indices = @transform_2, window_bounds = array<i64: 1, 128>}, {transform_indices = @transform_3, window_bounds = array<i64: 16, 128>}]} {
    %c0 = arith.constant 0 : index
    %c0_0 = arith.constant 0 : index
    %0 = vector.load %arg2[%c0, %c0_0] : memref<16x128xf32, #tpu.memory_space<vmem>>, vector<16x128xf32>
    %c0_1 = arith.constant 0 : index
    %c0_2 = arith.constant 0 : index
    %1 = vector.load %arg3[%c0_1, %c0_2] : memref<128x128xf32, #tpu.memory_space<vmem>>, vector<128x128xf32>
    %cst = arith.constant dense<0.000000e+00> : vector<16x128xf32>
    %2 = tpu.matmul %0, %1, %cst {dimension_numbers = #tpu.dot_dimension_numbers<[1], [1], [0], [0], [0, 0, 1, 0], [], []>} : vector<16x128xf32>, vector<128x128xf32>, vector<16x128xf32> -> vector<16x128xf32>
    %3 = math.tanh %2 : vector<16x128xf32>
    %c0_3 = arith.constant 0 : index
    %c0_4 = arith.constant 0 : index
    %4 = vector.load %arg4[%c0_3, %c0_4] : memref<1x128xf32, #tpu.memory_space<vmem>>, vector<1x128xf32>
    %5 = vector.broadcast %4 : vector<1x128xf32> to vector<16x128xf32>
    %6 = arith.addf %3, %5 : vector<16x128xf32>
    %c0_5 = arith.constant 0 : index
    %c0_6 = arith.constant 0 : index
    %7 = vector.load %arg5[%c0_5, %c0_6] : memref<16x128xf32, #tpu.memory_space<vmem>>, vector<16x128xf32>
    tpu.vector_store %arg5[%c0_5, %c0_6], %6 {strides = array<i32>} : memref<16x128xf32, #tpu.memory_space<vmem>>, vector<16x128xf32>,
    return
  }
  func.func @transform_0(%arg0: i32, %arg1: i32) -> (i32, i32) {
    %c0_i32 = arith.constant 0 : i32
    %c0_i32_0 = arith.constant 0 : i32
    return %arg0, %c0_i32 : i32, i32
  }
  func.func @transform_1(%arg0: i32, %arg1: i32) -> (i32, i32) {
    %c0_i32 = arith.constant 0 : i32
    %c0_i32_0 = arith.constant 0 : i32
    return %arg1, %c0_i32 : i32, i32
  }
  func.func @transform_2(%arg0: i32, %arg1: i32) -> (i32, i32) {
    %c0_i32 = arith.constant 0 : i32
    %c0_i32_0 = arith.constant 0 : i32
    return %c0_i32, %arg1 : i32, i32
  }
  func.func @transform_3(%arg0: i32, %arg1: i32) -> (i32, i32) {
    %c0_i32 = arith.constant 0 : i32
    return %arg0, %arg1 : i32, i32
  }
}

</mosaic_0001>

<bundles_post_ra>
// kernel: linear_tanh.1
= control target key start
LH: loop header
LB: loop body
LE: loop exit
PB: predicated region body
PF: predicated region fallthrough
CT: control target
= control target key end

     0   :  { %s346_s0 = inlined_call_operand.vmem [shape: f32[16,128], index: 0, kind: input, shape index: {}]   ;;  %s347_s1 = inlined_call_operand.vmem [shape: f32[128,128], index: 1, kind: input, shape index: {}]   ;;  %s348_s2 = inlined_call_operand.vmem [shape: f32[1,128], index: 2, kind: input, shape index: {}]   ;;  %s349_s3 = inlined_call_operand.hbm [shape: f32[16,128], index: 3, kind: output, shape index: {}]  }
   0x1   :  { %v17_v0 = vld [vmem:[%s347_s1] sm:$0xff]  ;;  %v18_v1 = vld [vmem:[%s347_s1 + $0x8] sm:$0xff]  ;;  %v19_v2 = vld [vmem:[%s347_s1 + $0x10] sm:$0xff] }
   0x2   :  { %v191_v3 = vpack.c.bf16 %v18_v1, %v17_v0  ;;  %v20_v4 = vld [vmem:[%s347_s1 + $0x18] sm:$0xff]  ;;  %v15_v6 = vld [vmem:[%s346_s0] sm:$0xff]  ;;  %v22_v8 = vld [vmem:[%s347_s1 + $0x28] sm:$0xff] }
   0x3   :  { %v195_v5 = vpack.c.bf16 %v20_v4, %v19_v2  ;;  %v21_v7 = vld [vmem:[%s347_s1 + $0x20] sm:$0xff]  ;;  %188 = vmatprep.mubr.f32.mxu0 %v15_v6 }
   0x4   :  { %192 = vmatprep.subr.bf16.mxu0 %v191_v3 }
   0x5   :  { %194 = vmatpush3.bf16.xpose.msra.mxu0 %v191_v3 }
   0x6   :  { %196 = vmatprep.subr.bf16.mxu0 %v195_v5 }
   0x7   :  { %8 = vsyncpa [#allocation3], 0  ;;  %v199_v9 = vpack.c.bf16 %v22_v8, %v21_v7  ;;  %v23_v10 = vld [vmem:[%s347_s1 + $0x30] sm:$0xff]  ;;  %v24_v11 = vld [vmem:[%s347_s1 + $0x38] sm:$0xff]  ;;  %s254_s23 = smov [#allocation2]  }
   0x8   :  { %v203_v12 = vpack.c.bf16 %v24_v11, %v23_v10  ;;  %v25_v13 = vld [vmem:[%s347_s1 + $0x40] sm:$0xff]  ;;  %v26_v14 = vld [vmem:[%s347_s1 + $0x48] sm:$0xff]  ;;  %v27_v16 = vld [vmem:[%s347_s1 + $0x50] sm:$0xff]  ;;  %s126_s24 = sshll.u32 %s254_s23, 4  ;;  %s127_s24 = int_to_ptr.vmem [resolvable:$true] %s126_s24 }
   0x9   :  { %v207_v15 = vpack.c.bf16 %v26_v14, %v25_v13  ;;  %v28_v17 = vld [vmem:[%s347_s1 + $0x58] sm:$0xff]  ;;  %v29_v19 = vld [vmem:[%s347_s1 + $0x60] sm:$0xff]  ;;  %v30_v20 = vld [vmem:[%s347_s1 + $0x68] sm:$0xff]  ;;  %p235_p1 = scmp.lt.s32.totalorder %s127_s24, %s127_s24 }
   0xa   :  { %v211_v18 = vpack.c.bf16 %v28_v17, %v27_v16  ;;  %v215_v21 = vpack.c.bf16 %v30_v20, %v29_v19  ;;  %v31_v22 = vld [vmem:[%s347_s1 + $0x70] sm:$0xff]  ;;  %v32_v23 = vld [vmem:[%s347_s1 + $0x78] sm:$0xff]  ;;  %v16_v25 = vld [vmem:[%s346_s0 + $0x8] sm:$0xff]  ;;  %s230_s1 = scalar_lea.vmem %s127_s24, 256 }
   0xb   :  { %v219_v24 = vpack.c.bf16 %v32_v23, %v31_v22  ;;  %v137_v28 = vld [vmem:[%s348_s2] ss:$0 sm:$0xff]  ;;  %p231_p0 = scmp.ne.s32.totalorder %s127_s24, %s230_s1  ;;  %p236_p2 = scmp.lt.s32.totalorder %s230_s1, %s230_s1 }
   0xd   :  { %198 = vmatpush3.bf16.xpose.msra.mxu0 %v195_v5  ;;  %p237_p3 = por %p236_p2, %p235_p1 }
   0xe   :  { %200 = vmatprep.subr.bf16.mxu0 %v199_v9 }
   0xf   :  { %p238_p4 = pnand %p237_p3, %p231_p0 }
  0x15   :  { %202 = vmatpush3.bf16.xpose.msra.mxu0 %v199_v9 }
  0x16   :  { %204 = vmatprep.subr.bf16.mxu0 %v203_v12 }
  0x1d   :  { %206 = vmatpush3.bf16.xpose.msra.mxu0 %v203_v12 }
  0x1e   :  { %208 = vmatprep.subr.bf16.mxu0 %v207_v15 }
  0x25   :  { %210 = vmatpush3.bf16.xpose.msra.mxu0 %v207_v15 }
  0x26   :  { %212 = vmatprep.subr.bf16.mxu0 %v211_v18 }
  0x2d   :  { %214 = vmatpush3.bf16.xpose.msra.mxu0 %v211_v18 }
  0x2e   :  { %216 = vmatprep.subr.bf16.mxu0 %v215_v21 }
  0x35   :  { %218 = vmatpush3.bf16.xpose.msra.mxu0 %v215_v21 }
  0x36   :  { %220 = vmatprep.subr.bf16.mxu0 %v219_v24 }
  0x3d   :  { %222 = vmatpush3.bf16.xpose.msra.mxu0 %v219_v24 }
  0x44   :  { %189 = vmatmul.mubr.f32.vlgmr.msra.gmra.mrb[0].mxu0 %v16_v25 }
 0x117   :  { %v190_v26 = vpop.f32.mrb[0].mxu0 }
 0x118   :  { %226 = vtanh.f32 %v190_v26  ;;  %v99_v27 = vpop.f32.mrb[1].mxu0 }
 0x119   :  { %228 = vtanh.f32 %v99_v27 }
 0x122   :  { %v227_v29 = vpop.eup %226 }
 0x123   :  { %v229_v30 = vpop.eup %228  ;;  %v118_v31 = vadd.f32 %v227_v29, %v137_v28 }
 0x124   :  { %v117_v32 = vadd.f32 %v229_v30, %v137_v28 }
 0x125   :  { %120 = vst [vmem:[#allocation2 + $0x8] sm:$0xff] %v118_v31 }
 0x126   :  { %119 = vst [vmem:[#allocation2] sm:$0xff] %v117_v32 }
 0x127   :  { %241 = shalt.err (!%p238_p4)
}
 0x128   :  { %s242_s2 = scalar_lea.hbm %s349_s3, 256 }
 0x129   :  { %p243_p5 = scmp.ne.s32.totalorder %s349_s3, %s242_s2  ;;  %p246_p6 = scmp.lt.u32.totalorder %s242_s2, %s349_s3 }
 0x12b   :  { %p248_p7 = pnand %p246_p6, %p243_p5 }
 0x12d   :  { %251 = shalt.err (!%p248_p7)
}
 0x12e   :  { %s255_s30 = smov 128   ;;  %s256_s4 = smov 8  }
 0x12f   :  { %132 = dma.vmem_to_hbm [thread:$0]  %s127_s24, 256, %s349_s3, [#allocation3], %s255_s30, %s255_s30, %s256_s4  }
 0x130   :  { %252 = dma.done.wait [#allocation3], 256  }
 0x131   :  { %253 = vsyncadd [#allocation3], 4294967040 }
 0x132   :  { %136 = vsyncpa [#allocation3], 1 }

</bundles_post_ra>
